<compile_context>
chip_gen: v6e
topology: v6e:2x2x1
jax: 0.10.0
libtpu: 0.0.40
codegen_flags: <defaults>
</compile_context>

<pallas_src>
import functools

import jax
import jax.numpy as jnp
from jax.experimental import pallas as pl
from jax.experimental.pallas import tpu as pltpu


def _make_dense_kernel(n_layers: int):
    """Fused MLP kernel: x -> L0 -> L1 -> ... -> L{n-1}, all in VMEM.

    refs = (x_ref, w0_ref, b0_ref, w1_ref, b1_ref, ..., o_ref)
    """

    def kernel(*refs):
        x_ref = refs[0]
        o_ref = refs[-1]
        h = x_ref[...]
        for l in range(n_layers):
            w = refs[1 + 2 * l][...]
            b = refs[2 + 2 * l][...]
            # MXU matmul with f32 accumulation; bias broadcasts from (1, D_out).
            h = jnp.dot(h, w, preferred_element_type=jnp.float32) + b
        o_ref[...] = h.astype(o_ref.dtype)

    return kernel


def _dense_single_block(x, flat_params, n_layers, d_out):
    """Small-batch path: one grid-free kernel, everything a full VMEM block."""
    B = x.shape[0]
    kernel = _make_dense_kernel(n_layers)
    vmem_spec = pl.BlockSpec(memory_space=pltpu.MemorySpace.VMEM)
    return pl.pallas_call(
        kernel,
        out_shape=jax.ShapeDtypeStruct((B, d_out), x.dtype),
        in_specs=[vmem_spec] * (1 + 2 * n_layers),
        out_specs=vmem_spec,
    )(x, *flat_params)


def _dense_batch_tiled(x, flat_params, n_layers, d_out, batch_tile):
    """Large-batch path: grid over batch ('parallel'), weights resident in VMEM."""
    B, D_in = x.shape
    kernel = _make_dense_kernel(n_layers)
    grid = (B // batch_tile,)
    in_specs = [pl.BlockSpec((batch_tile, D_in), lambda i: (i, 0))]
    for p in flat_params:
        # Same block for every grid step -> parameters stay resident in VMEM.
        in_specs.append(pl.BlockSpec(p.shape, lambda i: (0, 0)))
    out_specs = pl.BlockSpec((batch_tile, d_out), lambda i: (i, 0))
    return pl.pallas_call(
        kernel,
        out_shape=jax.ShapeDtypeStruct((B, d_out), x.dtype),
        grid_spec=pl.GridSpec(grid=grid, in_specs=in_specs, out_specs=out_specs),
        compiler_params=pltpu.CompilerParams(dimension_semantics=("parallel",)),
    )(x, *flat_params)


@functools.partial(jax.jit, static_argnames=("batch_tile",))
def dense_forward(x, params, *, batch_tile=256):
    """Sequential application of the Linear layers (the module's forward)."""
    n_layers = len(params)
    d_out = params[-1][0].shape[1]
    flat_params = []
    for w, b in params:
        flat_params.extend((w, b))
    flat_params = tuple(flat_params)

    B = x.shape[0]
    if B <= batch_tile:
        return _dense_single_block(x, flat_params, n_layers, d_out)

    # Pad batch to a multiple of batch_tile so every grid step is a full tile.
    pad = (-B) % batch_tile
    if pad:
        x = jnp.pad(x, ((0, pad), (0, 0)))
    out = _dense_batch_tiled(x, flat_params, n_layers, d_out, batch_tile)
    return out[:B] if pad else out


def dense_forward_ref(x, params):
    """Pure-JAX reference for correctness checking."""
    for w, b in params:
        x = x @ w + b
    return x


def init_dense_params(key, input_dim, hidden_dims, output_dim, dtype=jnp.float32):
    """Deterministic init mimicking nn.Linear's default U(-1/sqrt(in), 1/sqrt(in))."""
    dims = [input_dim] + list(hidden_dims) + [output_dim]
    params = []
    for d_in, d_out in zip(dims[:-1], dims[1:]):
        key, kw, kb = jax.random.split(key, 3)
        bound = 1.0 / (d_in ** 0.5)
        # Weight stored as (d_in, d_out) == W.T of PyTorch's (out, in) layout.
        w = jax.random.uniform(kw, (d_in, d_out), dtype, minval=-bound, maxval=bound)
        b = jax.random.uniform(kb, (1, d_out), dtype, minval=-bound, maxval=bound)
        params.append((w, b))
    return params


if __name__ == "__main__":
    input_dim = 32
    hidden_dims = [64, 48]
    output_dim = 16
    batch = 8

    key = jax.random.PRNGKey(0)
    k_params, k_x, k_x_big = jax.random.split(key, 3)

    params = init_dense_params(k_params, input_dim, hidden_dims, output_dim)

    # Small batch -> fused single-block kernel (one launch, no HBM round-trips).
    x = jax.random.normal(k_x, (batch, input_dim), dtype=jnp.float32)
    out = jax.block_until_ready(dense_forward(x, params))
    ref = dense_forward_ref(x, params)
    assert out.shape == (batch, output_dim), out.shape
    assert jnp.allclose(out, ref, atol=1e-4, rtol=1e-4), "mismatch vs reference (small batch)"

    # Large batch -> batch-tiled 'parallel' grid path with weights resident in VMEM.
    x_big = jax.random.normal(k_x_big, (600, input_dim), dtype=jnp.float32)
    out_big = jax.block_until_ready(dense_forward(x_big, params))
    ref_big = dense_forward_ref(x_big, params)
    assert out_big.shape == (600, output_dim), out_big.shape
    assert jnp.allclose(out_big, ref_big, atol=1e-4, rtol=1e-4), "mismatch vs reference (tiled batch)"

    print("KERNEL_OK")
</pallas_src>

<mosaic_0001>
module attributes {stable_mosaic.version = 11 : i64} {
  func.func @kernel(%arg0: memref<8x32xf32, #tpu.memory_space<vmem>>, %arg1: memref<32x64xf32, #tpu.memory_space<vmem>>, %arg2: memref<1x64xf32, #tpu.memory_space<vmem>>, %arg3: memref<64x48xf32, #tpu.memory_space<vmem>>, %arg4: memref<1x48xf32, #tpu.memory_space<vmem>>, %arg5: memref<48x16xf32, #tpu.memory_space<vmem>>, %arg6: memref<1x16xf32, #tpu.memory_space<vmem>>, %arg7: memref<8x16xf32, #tpu.memory_space<vmem>>) attributes {dimension_semantics = [], scalar_prefetch = 0 : i64, scratch_operands = 0 : i64, tpu.core_type = #tpu.core_type<tc>} {
    %c0 = arith.constant 0 : index
    %c0_0 = arith.constant 0 : index
    %0 = vector.load %arg0[%c0, %c0_0] : memref<8x32xf32, #tpu.memory_space<vmem>>, vector<8x32xf32>
    %c0_1 = arith.constant 0 : index
    %c0_2 = arith.constant 0 : index
    %1 = vector.load %arg1[%c0_1, %c0_2] : memref<32x64xf32, #tpu.memory_space<vmem>>, vector<32x64xf32>
    %c0_3 = arith.constant 0 : index
    %c0_4 = arith.constant 0 : index
    %2 = vector.load %arg2[%c0_3, %c0_4] : memref<1x64xf32, #tpu.memory_space<vmem>>, vector<1x64xf32>
    %cst = arith.constant dense<0.000000e+00> : vector<8x64xf32>
    %3 = tpu.matmul %0, %1, %cst {dimension_numbers = #tpu.dot_dimension_numbers<[1], [0], [0], [1], [0, 0, 1, 1], [], []>} : vector<8x32xf32>, vector<32x64xf32>, vector<8x64xf32> -> vector<8x64xf32>
    %4 = vector.broadcast %2 : vector<1x64xf32> to vector<8x64xf32>
    %5 = arith.addf %3, %4 : vector<8x64xf32>
    %c0_5 = arith.constant 0 : index
    %c0_6 = arith.constant 0 : index
    %6 = vector.load %arg3[%c0_5, %c0_6] : memref<64x48xf32, #tpu.memory_space<vmem>>, vector<64x48xf32>
    %c0_7 = arith.constant 0 : index
    %c0_8 = arith.constant 0 : index
    %7 = vector.load %arg4[%c0_7, %c0_8] : memref<1x48xf32, #tpu.memory_space<vmem>>, vector<1x48xf32>
    %cst_9 = arith.constant dense<0.000000e+00> : vector<8x48xf32>
    %8 = tpu.matmul %5, %6, %cst_9 {dimension_numbers = #tpu.dot_dimension_numbers<[1], [0], [0], [1], [0, 0, 1, 1], [], []>} : vector<8x64xf32>, vector<64x48xf32>, vector<8x48xf32> -> vector<8x48xf32>
    %9 = vector.broadcast %7 : vector<1x48xf32> to vector<8x48xf32>
    %10 = arith.addf %8, %9 : vector<8x48xf32>
    %c0_10 = arith.constant 0 : index
    %c0_11 = arith.constant 0 : index
    %11 = vector.load %arg5[%c0_10, %c0_11] : memref<48x16xf32, #tpu.memory_space<vmem>>, vector<48x16xf32>
    %c0_12 = arith.constant 0 : index
    %c0_13 = arith.constant 0 : index
    %12 = vector.load %arg6[%c0_12, %c0_13] : memref<1x16xf32, #tpu.memory_space<vmem>>, vector<1x16xf32>
    %cst_14 = arith.constant dense<0.000000e+00> : vector<8x16xf32>
    %13 = tpu.matmul %10, %11, %cst_14 {dimension_numbers = #tpu.dot_dimension_numbers<[1], [0], [0], [1], [0, 0, 1, 1], [], []>} : vector<8x48xf32>, vector<48x16xf32>, vector<8x16xf32> -> vector<8x16xf32>
    %14 = vector.broadcast %12 : vector<1x16xf32> to vector<8x16xf32>
    %15 = arith.addf %13, %14 : vector<8x16xf32>
    %c0_15 = arith.constant 0 : index
    %c0_16 = arith.constant 0 : index
    %16 = vector.load %arg7[%c0_15, %c0_16] : memref<8x16xf32, #tpu.memory_space<vmem>>, vector<8x16xf32>
    tpu.vector_store %arg7[%c0_15, %c0_16], %15 {strides = array<i32>} : memref<8x16xf32, #tpu.memory_space<vmem>>, vector<8x16xf32>,
    return
  }
}

</mosaic_0001>

<bundles_post_ra>
// kernel: dense_forward.1
= control target key start
LH: loop header
LB: loop body
LE: loop exit
PB: predicated region body
PF: predicated region fallthrough
CT: control target
= control target key end

     0   :  { %v402_v1 = vmov 0.0   ;;  %vm403_vm0 = vmmov 0   ;;  %s538_s0 = inlined_call_operand.vmem [shape: f32[8,32], index: 0, kind: input, shape index: {}]   ;;  %s539_s1 = inlined_call_operand.vmem [shape: f32[32,64], index: 1, kind: input, shape index: {}]   ;;  %s540_s2 = inlined_call_operand.vmem [shape: f32[1,64], index: 2, kind: input, shape index: {}]   ;;  %s541_s3 = inlined_call_operand.vmem [shape: f32[64,48], index: 3, kind: input, shape index: {}]   ;;  %s542_s4 = inlined_call_operand.vmem [shape: f32[1,48], index: 4, kind: input, shape index: {}]   ;;  %s543_s5 = inlined_call_operand.vmem [shape: f32[48,16], index: 5, kind: input, shape index: {}]   ;;  %s544_s6 = inlined_call_operand.vmem [shape: f32[1,16], index: 6, kind: input, shape index: {}]   ;;  %s545_s7 = inlined_call_operand.hbm [shape: f32[8,16], index: 7, kind: output, shape index: {}]  }
   0x1   :  { %v31_v0 = vld [vmem:[%s539_s1 + $0x18] sm:$0xff]  ;;  %332 = vmatprep.subr.mxu0 %v402_v1  ;;  %v30_v2 = vld [vmem:[%s539_s1 + $0x10] sm:$0xff]  ;;  %340 = vmatprep.mubr.msk.f32.mxu0 %vm403_vm0, %v402_v1  ;;  %v29_v5 = vld [vmem:[%s539_s1 + $0x8] sm:$0xff] }
   0x2   :  { %v120_v3 = vld [vmem:[%s541_s3 + $0x38] sm:$0xff]  ;;  %333 = vmatpush3.msra.mxu0 %v31_v0  ;;  %343 = vmatprep.subr.mxu1 %v402_v1  ;;  %v119_v4 = vld [vmem:[%s541_s3 + $0x30] sm:$0xff]  ;;  %v118_v6 = vld [vmem:[%s541_s3 + $0x28] sm:$0xff] }
   0x3   :  { %334 = vmatprep.subr.mxu0 %v402_v1  ;;  %344 = vmatpush3.msra.mxu1 %v120_v3 }
   0x4   :  { %335 = vmatpush3.msra.mxu0 %v30_v2  ;;  %345 = vmatprep.subr.mxu1 %v402_v1 }
   0x5   :  { %12 = vsyncpa [#allocation3], 0  ;;  %336 = vmatprep.subr.mxu0 %v402_v1  ;;  %v28_v7 = vld [vmem:[%s539_s1] sm:$0xff]  ;;  %346 = vmatpush3.msra.mxu1 %v119_v4  ;;  %vm39_vm1 = vcmask 261120   ;;  %v116_v10 = vld [vmem:[%s541_s3 + $0x18] sm:$0xff]  ;;  %vm128_vm2 = vcmask 523264  }
   0x6   :  { %337 = vmatpush3.msra.mxu0 %v29_v5  ;;  %v27_v8 = vld [vmem:[%s538_s0] sm:$0xff]  ;;  %347 = vmatprep.subr.mxu1 %v402_v1  ;;  %v115_v11 = vld [vmem:[%s541_s3 + $0x10] sm:$0xff]  ;;  %v114_v12 = vld [vmem:[%s541_s3 + $0x8] sm:$0xff]  ;;  %vm215_vm3 = vcmask 392192   ;;  %s404_s18 = smov [#allocation2]   ;;  %vm289_vm4 = vcmask 130048  }
   0x7   :  { %v117_v9 = vld [vmem:[%s541_s3 + $0x20] sm:$0xff]  ;;  %338 = vmatprep.subr.mxu0 %v402_v1  ;;  %348 = vmatpush3.msra.mxu1 %v118_v6  ;;  %v207_v14 = vld [vmem:[%s543_s5 + $0x28] sm:$0xff]  ;;  %v205_v16 = vld [vmem:[%s543_s5 + $0x18] sm:$0xff]  ;;  %s297_s1 = sshll.u32 %s404_s18, 4  ;;  %s298_s1 = int_to_ptr.vmem [resolvable:$true] %s297_s1 }
   0x8   :  { %339 = vmatpush3.msra.mxu0 %v28_v7  ;;  %349 = vmatprep.subr.mxu1 %v402_v1  ;;  %v113_v13 = vld [vmem:[%s541_s3] sm:$0xff]  ;;  %v204_v17 = vld [vmem:[%s543_s5 + $0x10] sm:$0xff]  ;;  %v203_v22 = vld [vmem:[%s543_s5 + $0x8] sm:$0xff]  ;;  %p385_p1 = scmp.lt.s32.totalorder %s298_s1, %s298_s1 }
   0x9   :  { %341 = vmatmul.mubr.msk.f32.vlgmr.msra.gmra.mxu0 %vm39_vm1, %v27_v8  ;;  %350 = vmatpush3.msra.mxu1 %v117_v9  ;;  %v206_v15 = vld [vmem:[%s543_s5 + $0x20] sm:$0xff] }
   0xa   :  { %351 = vmatprep.subr.mxu1 %v402_v1  ;;  %359 = vmatprep.mubr.msk.f32.mxu1 %vm403_vm0, %v402_v1  ;;  %v305_v18 = vld [vmem:[%s540_s2] ss:$0 sm:$0xff] }
   0xb   :  { %352 = vmatpush3.msra.mxu1 %v116_v10  ;;  %362 = vmatprep.subr.mxu0 %v402_v1  ;;  %v202_v23 = vld [vmem:[%s543_s5] sm:$0xff]  ;;  %s380_s5 = scalar_lea.vmem %s298_s1, 128 }
   0xc   :  { %353 = vmatprep.subr.mxu1 %v402_v1  ;;  %374 = vmatprep.mubr.msk.f32.mxu0 %vm403_vm0, %v402_v1  ;;  %v307_v24 = vld [vmem:[%s542_s4] ss:$0 sm:$0xff]  ;;  %p381_p0 = scmp.ne.s32.totalorder %s298_s1, %s380_s5  ;;  %p386_p2 = scmp.lt.s32.totalorder %s380_s5, %s380_s5 }
   0xd   :  { %354 = vmatpush3.msra.mxu1 %v115_v11  ;;  %363 = vmatpush3.msra.mxu0 %v207_v14  ;;  %v309_v28 = vld [vmem:[%s544_s6] ss:$0 sm:$0xff] }
   0xe   :  { %355 = vmatprep.subr.mxu1 %v402_v1  ;;  %364 = vmatprep.subr.mxu0 %v402_v1  ;;  %p387_p3 = por %p386_p2, %p385_p1 }
   0xf   :  { %356 = vmatpush3.msra.mxu1 %v114_v12  ;;  %365 = vmatpush3.msra.mxu0 %v206_v15 }
  0x10   :  { %357 = vmatprep.subr.mxu1 %v402_v1  ;;  %366 = vmatprep.subr.mxu0 %v402_v1  ;;  %p388_p4 = pnand %p387_p3, %p381_p0 }
  0x11   :  { %358 = vmatpush3.msra.mxu1 %v113_v13  ;;  %367 = vmatpush3.msra.mxu0 %v205_v16 }
  0x12   :  { %368 = vmatprep.subr.mxu0 %v402_v1 }
  0x13   :  { %369 = vmatpush3.msra.mxu0 %v204_v17 }
  0x14   :  { %370 = vmatprep.subr.mxu0 %v402_v1 }
  0x15   :  { %371 = vmatpush3.msra.mxu0 %v203_v22 }
  0x16   :  { %372 = vmatprep.subr.mxu0 %v402_v1 }
  0x17   :  { %373 = vmatpush3.msra.mxu0 %v202_v23 }
  0xc9   :  { %v109_v19 = vpop.f32.mrf.mxu0 }
  0xca   :  { %v110_v20 = vadd.f32 %v305_v18, %v109_v19 }
  0xcb   :  { %v342_v21 = vpop.f32.mrf.mxu0 }
  0xcc   :  { %360 = vmatmul.mubr.msk.f32.vlgmr.msra.gmra.mxu1 %vm128_vm2, %v110_v20 }
 0x18c   :  { %v198_v25 = vpop.f32.mrf.mxu1 }
 0x18d   :  { %v199_v26 = vadd.f32 %v307_v24, %v198_v25 }
 0x18e   :  { %v361_v27 = vpop.f32.mrf.mxu1 }
 0x18f   :  { %375 = vmatmul.mubr.msk.f32.vlgmr.msra.gmra.mxu0 %vm215_vm3, %v199_v26 }
 0x24f   :  { %v285_v29 = vpop.f32.mrf.mxu0 }
 0x250   :  { %v286_v30 = vadd.f32 %v309_v28, %v285_v29 }
 0x251   :  { %v376_v31 = vpop.f32.mrf.mxu0 }
 0x252   :  { %290 = vst.msk [vmem:[#allocation2] sm:$0xff] %vm289_vm4, %v286_v30 }
 0x253   :  { %391 = shalt.err (!%p388_p4)
}
 0x254   :  { %300 = dma.vmem_to_hbm [thread:$0]  %s298_s1, 128, %s545_s7, [#allocation3]  }
 0x255   :  { %400 = dma.done.wait [#allocation3], 128  }
 0x256   :  { %401 = vsyncadd [#allocation3], 4294967168 }
 0x257   :  { %304 = vsyncpa [#allocation3], 1 }

</bundles_post_ra>
